<compile_context>
chip_gen: v6e
topology: v6e:2x2x1
jax: 0.10.0
libtpu: 0.0.40
codegen_flags: <defaults>
</compile_context>

<pallas_src>
import functools

import jax
import jax.numpy as jnp
from jax import lax
from jax.experimental import pallas as pl
from jax.experimental.pallas import tpu as pltpu


def _afmse_kernel(y_ref, pred_ref, degs_ref, sq_ref, deg_ref, *,
                  genes, n_gene_steps, need_col_mask):
    k = pl.program_id(1)            # gene-tile index ("arbitrary" reduction)
    tb, tg = degs_ref.shape

    # Output blocks are resident across the gene axis: zero on the first gene
    # tile, accumulate on every step; Pallas writes back when the batch-tile
    # index advances.
    @pl.when(k == 0)
    def _():
        sq_ref[...] = jnp.zeros_like(sq_ref)
        deg_ref[...] = jnp.zeros_like(deg_ref)

    def accumulate(mask_tail):
        # One 128-lane chunk at a time: loads, casts, diff^2 and the
        # accumulator read-modify-write stay within a handful of vregs (no
        # spills).  The cross-lane fold is deferred to the JAX epilogue and
        # the (tb, 128) outputs stay lane-dense (unmasked vst).
        for j in range(tg // 128):
            sl = pl.ds(j * 128, 128)
            y = y_ref[:, sl].astype(jnp.float32)
            p = pred_ref[:, sl].astype(jnp.float32)
            d = degs_ref[:, sl].astype(jnp.float32)
            diff = (y - p) * d          # == y*d - p*d for a 0/1 DE mask
            sq = diff * diff
            if mask_tail:
                col = (lax.broadcasted_iota(jnp.int32, (tb, 128), 1)
                       + k * tg + j * 128)
                ok = col < genes
                # Mask sq as well as d: tail columns hold unspecified data and
                # NaN/Inf garbage in y/pred would survive a d-only mask.
                sq = jnp.where(ok, sq, 0.0)
                d = jnp.where(ok, d, 0.0)
            sq_ref[...] += sq
            deg_ref[...] += d

    if need_col_mask and n_gene_steps > 1:
        last = n_gene_steps - 1

        @pl.when(k == last)          # tail gene tile: masked path
        def _():
            accumulate(True)

        @pl.when(k < last)           # interior gene tiles: unmasked fast path
        def _():
            accumulate(False)
    else:
        accumulate(need_col_mask)


def afmse_loss(y, pred, degs, *, batch_tile=256, gene_tile=2048):
    B, G = y.shape
    assert pred.shape == (B, G) and degs.shape == (B, G)

    itemsizes = [jnp.dtype(a.dtype).itemsize for a in (y, pred, degs)]
    # Sublane multiple for the most tightly packed input dtype:
    # f32 -> 8, bf16 -> 16, int8 -> 32.
    sub = max(8, 32 // min(itemsizes))

    # Batch tile: sublane-aligned; keep the "parallel" batch axis at >= 2 grid
    # steps when possible so both v7x TensorCores get work.
    tb = min(batch_tile, pl.cdiv(B, sub) * sub)
    if B > sub:
        tb = min(tb, pl.cdiv(pl.cdiv(B, 2), sub) * sub)
    tb = max(sub, (tb // sub) * sub)

    # Gene tile: lane-aligned; callers never pad G (cdiv grid + tail masking).
    tg = max(128, (min(gene_tile, pl.cdiv(G, 128) * 128) // 128) * 128)

    # VMEM budget: 3 inputs x 2 pipeline buffers + 2 outputs x 2 buffers.
    def vmem_need(tb_, tg_):
        return 2 * tb_ * tg_ * sum(itemsizes) + 2 * 2 * tb_ * 128 * 4

    budget = 24 * 1024 * 1024
    while vmem_need(tb, tg) > budget and tg > 512:
        tg = max(512, ((tg // 2) // 128) * 128)
    while vmem_need(tb, tg) > budget and tb > sub:
        tb = max(sub, ((tb // 2) // sub) * sub)

    # Set the scoped-VMEM limit explicitly (v5e default is only 16 MiB) with
    # headroom for compiler temporaries; stays well under v7x's 64 MiB.
    vmem_limit = int(min(max(vmem_need(tb, tg) + (8 << 20), 16 << 20), 48 << 20))

    grid = (pl.cdiv(B, tb), pl.cdiv(G, tg))

    kernel = functools.partial(
        _afmse_kernel,
        genes=G,
        n_gene_steps=grid[1],
        need_col_mask=(G % tg != 0),
    )

    bytes_in = sum(int(a.size) * jnp.dtype(a.dtype).itemsize
                   for a in (y, pred, degs))
    cost = pl.CostEstimate(flops=5 * B * G, transcendentals=0,
                           bytes_accessed=bytes_in + 2 * B * 128 * 4)

    sq_part, deg_part = pl.pallas_call(
        kernel,
        out_shape=(jax.ShapeDtypeStruct((B, 128), jnp.float32),
                   jax.ShapeDtypeStruct((B, 128), jnp.float32)),
        grid_spec=pltpu.PrefetchScalarGridSpec(
            num_scalar_prefetch=0,
            grid=grid,
            in_specs=[
                pl.BlockSpec((tb, tg), lambda i, k: (i, k)),
                pl.BlockSpec((tb, tg), lambda i, k: (i, k)),
                pl.BlockSpec((tb, tg), lambda i, k: (i, k)),
            ],
            out_specs=[
                pl.BlockSpec((tb, 128), lambda i, k: (i, 0)),
                pl.BlockSpec((tb, 128), lambda i, k: (i, 0)),
            ],
        ),
        compiler_params=pltpu.CompilerParams(
            dimension_semantics=("parallel", "arbitrary"),
            vmem_limit_bytes=vmem_limit,
        ),
        cost_estimate=cost,
    )(y, pred, degs)

    # Tiny epilogue in plain JAX (keeps the kernel's batch axis parallel).
    sq_row = jnp.sum(sq_part, axis=1)          # sum_g (y*d - p*d)^2 per row
    num_degs = jnp.sum(deg_part, axis=1)       # sum_g degs per row
    mse = sq_row / (num_degs + 1e-6)
    nnz = jnp.sum(num_degs != 0.0).astype(jnp.float32)
    return jnp.sum(mse) / (nnz + 1e-6)


def afmse_loss_ref(y, pred, degs):
    # Pure-JAX reference mirroring the PyTorch forward.
    degs = degs.astype(jnp.float32)
    y = y.astype(jnp.float32)
    pred = pred.astype(jnp.float32)
    diff = y * degs - pred * degs
    mse = (diff ** 2).sum(axis=1)
    num_degs = degs.sum(axis=1)
    mse = mse / (num_degs + 1e-6)
    nnz = jnp.sum(num_degs != 0)
    return jnp.sum(mse) / (nnz + 1e-6)


if __name__ == "__main__":
    key = jax.random.PRNGKey(0)
    k1, k2, k3 = jax.random.split(key, 3)

    # B not a multiple of the 8-row batch tile and G not a multiple of the
    # gene tile: exercises batch-tail writeback clipping AND gene-tail column
    # masking (the previous NaN failure mode).
    B, G = 10, 1000
    y = jax.random.normal(k1, (B, G), dtype=jnp.float32)
    pred = jax.random.normal(k2, (B, G), dtype=jnp.float32)
    degs = jax.random.bernoulli(k3, p=0.25, shape=(B, G)).astype(jnp.float32)
    # One row with zero DE genes exercises the nonzero-row counting.
    degs = degs.at[3, :].set(0.0)

    ref = afmse_loss_ref(y, pred, degs)

    # Multi-gene-tile path (2 gene tiles, tail mask only on the last one).
    out1 = jax.block_until_ready(afmse_loss(y, pred, degs, gene_tile=512))
    assert jnp.allclose(out1, ref, rtol=1e-5, atol=1e-6), (out1, ref)

    # Single-gene-tile path (default tiles, masked single step).
    out2 = jax.block_until_ready(afmse_loss(y, pred, degs))
    assert jnp.allclose(out2, ref, rtol=1e-5, atol=1e-6), (out2, ref)

    print("KERNEL_OK")
</pallas_src>

<mosaic_0001>
module attributes {stable_mosaic.version = 11 : i64} {
  func.func @_afmse_kernel(%arg0: i32, %arg1: i32, %arg2: memref<8x512xf32, #tpu.memory_space<vmem>>, %arg3: memref<8x512xf32, #tpu.memory_space<vmem>>, %arg4: memref<8x512xf32, #tpu.memory_space<vmem>>, %arg5: memref<8x128xf32, #tpu.memory_space<vmem>>, %arg6: memref<8x128xf32, #tpu.memory_space<vmem>>) attributes {dimension_semantics = [#tpu.dimension_semantics<parallel>, #tpu.dimension_semantics<arbitrary>], iteration_bounds = array<i64: 2, 2>, scalar_prefetch = 0 : i64, scratch_operands = 0 : i64, tpu.core_type = #tpu.core_type<tc>, window_params = [{transform_indices = @transform_0, window_bounds = array<i64: 8, 512>}, {transform_indices = @transform_1, window_bounds = array<i64: 8, 512>}, {transform_indices = @transform_2, window_bounds = array<i64: 8, 512>}, {transform_indices = @transform_3, window_bounds = array<i64: 8, 128>}, {transform_indices = @transform_4, window_bounds = array<i64: 8, 128>}]} {
    %c0_i32 = arith.constant 0 : i32
    %0 = arith.cmpi eq, %arg1, %c0_i32 : i32
    %1 = arith.extui %0 : i1 to i32
    %c0_i32_0 = arith.constant 0 : i32
    %2 = arith.cmpi ne, %1, %c0_i32_0 : i32
    scf.if %2 {
      %cst = arith.constant 0.000000e+00 : f32
      %9 = vector.broadcast %cst : f32 to vector<8x128xf32>
      %c0 = arith.constant 0 : index
      %c0_4 = arith.constant 0 : index
      %10 = vector.load %arg5[%c0, %c0_4] : memref<8x128xf32, #tpu.memory_space<vmem>>, vector<8x128xf32>
      tpu.vector_store %arg5[%c0, %c0_4], %9 {strides = array<i32>} : memref<8x128xf32, #tpu.memory_space<vmem>>, vector<8x128xf32>,
      %cst_5 = arith.constant 0.000000e+00 : f32
      %11 = vector.broadcast %cst_5 : f32 to vector<8x128xf32>
      %c0_6 = arith.constant 0 : index
      %c0_7 = arith.constant 0 : index
      %12 = vector.load %arg6[%c0_6, %c0_7] : memref<8x128xf32, #tpu.memory_space<vmem>>, vector<8x128xf32>
      tpu.vector_store %arg6[%c0_6, %c0_7], %11 {strides = array<i32>} : memref<8x128xf32, #tpu.memory_space<vmem>>, vector<8x128xf32>,
    } else {
    }
    %c1_i32 = arith.constant 1 : i32
    %3 = arith.cmpi eq, %arg1, %c1_i32 : i32
    %4 = arith.extui %3 : i1 to i32
    %c0_i32_1 = arith.constant 0 : i32
    %5 = arith.cmpi ne, %4, %c0_i32_1 : i32
    scf.if %5 {
      %c0 = arith.constant 0 : index
      %c0_4 = arith.constant 0 : index
      %9 = vector.load %arg2[%c0, %c0_4] : memref<8x512xf32, #tpu.memory_space<vmem>>, vector<8x128xf32>
      %c0_5 = arith.constant 0 : index
      %c0_6 = arith.constant 0 : index
      %10 = vector.load %arg3[%c0_5, %c0_6] : memref<8x512xf32, #tpu.memory_space<vmem>>, vector<8x128xf32>
      %c0_7 = arith.constant 0 : index
      %c0_8 = arith.constant 0 : index
      %11 = vector.load %arg4[%c0_7, %c0_8] : memref<8x512xf32, #tpu.memory_space<vmem>>, vector<8x128xf32>
      %12 = arith.subf %9, %10 : vector<8x128xf32>
      %13 = arith.mulf %12, %11 : vector<8x128xf32>
      %14 = arith.mulf %13, %13 : vector<8x128xf32>
      %15 = tpu.iota {dimensions = array<i32: 1>} : vector<8x128xi32>
      %c512_i32 = arith.constant 512 : i32
      %16 = arith.muli %arg1, %c512_i32 : i32
      %17 = vector.broadcast %16 : i32 to vector<8x128xi32>
      %18 = arith.addi %15, %17 : vector<8x128xi32>
      %c0_i32_9 = arith.constant 0 : i32
      %19 = vector.broadcast %c0_i32_9 : i32 to vector<8x128xi32>
      %20 = arith.addi %18, %19 : vector<8x128xi32>
      %c1000_i32 = arith.constant 1000 : i32
      %21 = vector.broadcast %c1000_i32 : i32 to vector<8x128xi32>
      %22 = arith.cmpi slt, %20, %21 : vector<8x128xi32>
      %cst = arith.constant 0.000000e+00 : f32
      %23 = vector.broadcast %cst : f32 to vector<8x128xf32>
      %24 = arith.select %22, %14, %23 : vector<8x128xi1>, vector<8x128xf32>
      %cst_10 = arith.constant 0.000000e+00 : f32
      %25 = vector.broadcast %cst_10 : f32 to vector<8x128xf32>
      %26 = arith.select %22, %11, %25 : vector<8x128xi1>, vector<8x128xf32>
      %c0_11 = arith.constant 0 : index
      %c0_12 = arith.constant 0 : index
      %27 = vector.load %arg5[%c0_11, %c0_12] : memref<8x128xf32, #tpu.memory_space<vmem>>, vector<8x128xf32>
      %28 = arith.addf %27, %24 : vector<8x128xf32>
      %c0_13 = arith.constant 0 : index
      %c0_14 = arith.constant 0 : index
      %29 = vector.load %arg5[%c0_13, %c0_14] : memref<8x128xf32, #tpu.memory_space<vmem>>, vector<8x128xf32>
      tpu.vector_store %arg5[%c0_13, %c0_14], %28 {strides = array<i32>} : memref<8x128xf32, #tpu.memory_space<vmem>>, vector<8x128xf32>,
      %c0_15 = arith.constant 0 : index
      %c0_16 = arith.constant 0 : index
      %30 = vector.load %arg6[%c0_15, %c0_16] : memref<8x128xf32, #tpu.memory_space<vmem>>, vector<8x128xf32>
      %31 = arith.addf %30, %26 : vector<8x128xf32>
      %c0_17 = arith.constant 0 : index
      %c0_18 = arith.constant 0 : index
      %32 = vector.load %arg6[%c0_17, %c0_18] : memref<8x128xf32, #tpu.memory_space<vmem>>, vector<8x128xf32>
      tpu.vector_store %arg6[%c0_17, %c0_18], %31 {strides = array<i32>} : memref<8x128xf32, #tpu.memory_space<vmem>>, vector<8x128xf32>,
      %c0_19 = arith.constant 0 : index
      %c128 = arith.constant 128 : index
      %33 = vector.load %arg2[%c0_19, %c128] : memref<8x512xf32, #tpu.memory_space<vmem>>, vector<8x128xf32>
      %c0_20 = arith.constant 0 : index
      %c128_21 = arith.constant 128 : index
      %34 = vector.load %arg3[%c0_20, %c128_21] : memref<8x512xf32, #tpu.memory_space<vmem>>, vector<8x128xf32>
      %c0_22 = arith.constant 0 : index
      %c128_23 = arith.constant 128 : index
      %35 = vector.load %arg4[%c0_22, %c128_23] : memref<8x512xf32, #tpu.memory_space<vmem>>, vector<8x128xf32>
      %36 = arith.subf %33, %34 : vector<8x128xf32>
      %37 = arith.mulf %36, %35 : vector<8x128xf32>
      %38 = arith.mulf %37, %37 : vector<8x128xf32>
      %39 = tpu.iota {dimensions = array<i32: 1>} : vector<8x128xi32>
      %c512_i32_24 = arith.constant 512 : i32
      %40 = arith.muli %arg1, %c512_i32_24 : i32
      %41 = vector.broadcast %40 : i32 to vector<8x128xi32>
      %42 = arith.addi %39, %41 : vector<8x128xi32>
      %c128_i32 = arith.constant 128 : i32
      %43 = vector.broadcast %c128_i32 : i32 to vector<8x128xi32>
      %44 = arith.addi %42, %43 : vector<8x128xi32>
      %c1000_i32_25 = arith.constant 1000 : i32
      %45 = vector.broadcast %c1000_i32_25 : i32 to vector<8x128xi32>
      %46 = arith.cmpi slt, %44, %45 : vector<8x128xi32>
      %cst_26 = arith.constant 0.000000e+00 : f32
      %47 = vector.broadcast %cst_26 : f32 to vector<8x128xf32>
      %48 = arith.select %46, %38, %47 : vector<8x128xi1>, vector<8x128xf32>
      %cst_27 = arith.constant 0.000000e+00 : f32
      %49 = vector.broadcast %cst_27 : f32 to vector<8x128xf32>
      %50 = arith.select %46, %35, %49 : vector<8x128xi1>, vector<8x128xf32>
      %c0_28 = arith.constant 0 : index
      %c0_29 = arith.constant 0 : index
      %51 = vector.load %arg5[%c0_28, %c0_29] : memref<8x128xf32, #tpu.memory_space<vmem>>, vector<8x128xf32>
      %52 = arith.addf %51, %48 : vector<8x128xf32>
      %c0_30 = arith.constant 0 : index
      %c0_31 = arith.constant 0 : index
      %53 = vector.load %arg5[%c0_30, %c0_31] : memref<8x128xf32, #tpu.memory_space<vmem>>, vector<8x128xf32>
      tpu.vector_store %arg5[%c0_30, %c0_31], %52 {strides = array<i32>} : memref<8x128xf32, #tpu.memory_space<vmem>>, vector<8x128xf32>,
      %c0_32 = arith.constant 0 : index
      %c0_33 = arith.constant 0 : index
      %54 = vector.load %arg6[%c0_32, %c0_33] : memref<8x128xf32, #tpu.memory_space<vmem>>, vector<8x128xf32>
      %55 = arith.addf %54, %50 : vector<8x128xf32>
      %c0_34 = arith.constant 0 : index
      %c0_35 = arith.constant 0 : index
      %56 = vector.load %arg6[%c0_34, %c0_35] : memref<8x128xf32, #tpu.memory_space<vmem>>, vector<8x128xf32>
      tpu.vector_store %arg6[%c0_34, %c0_35], %55 {strides = array<i32>} : memref<8x128xf32, #tpu.memory_space<vmem>>, vector<8x128xf32>,
      %c0_36 = arith.constant 0 : index
      %c256 = arith.constant 256 : index
      %57 = vector.load %arg2[%c0_36, %c256] : memref<8x512xf32, #tpu.memory_space<vmem>>, vector<8x128xf32>
      %c0_37 = arith.constant 0 : index
      %c256_38 = arith.constant 256 : index
      %58 = vector.load %arg3[%c0_37, %c256_38] : memref<8x512xf32, #tpu.memory_space<vmem>>, vector<8x128xf32>
      %c0_39 = arith.constant 0 : index
      %c256_40 = arith.constant 256 : index
      %59 = vector.load %arg4[%c0_39, %c256_40] : memref<8x512xf32, #tpu.memory_space<vmem>>, vector<8x128xf32>
      %60 = arith.subf %57, %58 : vector<8x128xf32>
      %61 = arith.mulf %60, %59 : vector<8x128xf32>
      %62 = arith.mulf %61, %61 : vector<8x128xf32>
      %63 = tpu.iota {dimensions = array<i32: 1>} : vector<8x128xi32>
      %c512_i32_41 = arith.constant 512 : i32
      %64 = arith.muli %arg1, %c512_i32_41 : i32
      %65 = vector.broadcast %64 : i32 to vector<8x128xi32>
      %66 = arith.addi %63, %65 : vector<8x128xi32>
      %c256_i32 = arith.constant 256 : i32
      %67 = vector.broadcast %c256_i32 : i32 to vector<8x128xi32>
      %68 = arith.addi %66, %67 : vector<8x128xi32>
      %c1000_i32_42 = arith.constant 1000 : i32
      %69 = vector.broadcast %c1000_i32_42 : i32 to vector<8x128xi32>
      %70 = arith.cmpi slt, %68, %69 : vector<8x128xi32>
      %cst_43 = arith.constant 0.000000e+00 : f32
      %71 = vector.broadcast %cst_43 : f32 to vector<8x128xf32>
      %72 = arith.select %70, %62, %71 : vector<8x128xi1>, vector<8x128xf32>
      %cst_44 = arith.constant 0.000000e+00 : f32
      %73 = vector.broadcast %cst_44 : f32 to vector<8x128xf32>
      %74 = arith.select %70, %59, %73 : vector<8x128xi1>, vector<8x128xf32>
      %c0_45 = arith.constant 0 : index
      %c0_46 = arith.constant 0 : index
      %75 = vector.load %arg5[%c0_45, %c0_46] : memref<8x128xf32, #tpu.memory_space<vmem>>, vector<8x128xf32>
      %76 = arith.addf %75, %72 : vector<8x128xf32>
      %c0_47 = arith.constant 0 : index
      %c0_48 = arith.constant 0 : index
      %77 = vector.load %arg5[%c0_47, %c0_48] : memref<8x128xf32, #tpu.memory_space<vmem>>, vector<8x128xf32>
      tpu.vector_store %arg5[%c0_47, %c0_48], %76 {strides = array<i32>} : memref<8x128xf32, #tpu.memory_space<vmem>>, vector<8x128xf32>,
      %c0_49 = arith.constant 0 : index
      %c0_50 = arith.constant 0 : index
      %78 = vector.load %arg6[%c0_49, %c0_50] : memref<8x128xf32, #tpu.memory_space<vmem>>, vector<8x128xf32>
      %79 = arith.addf %78, %74 : vector<8x128xf32>
      %c0_51 = arith.constant 0 : index
      %c0_52 = arith.constant 0 : index
      %80 = vector.load %arg6[%c0_51, %c0_52] : memref<8x128xf32, #tpu.memory_space<vmem>>, vector<8x128xf32>
      tpu.vector_store %arg6[%c0_51, %c0_52], %79 {strides = array<i32>} : memref<8x128xf32, #tpu.memory_space<vmem>>, vector<8x128xf32>,
      %c0_53 = arith.constant 0 : index
      %c384 = arith.constant 384 : index
      %81 = vector.load %arg2[%c0_53, %c384] : memref<8x512xf32, #tpu.memory_space<vmem>>, vector<8x128xf32>
      %c0_54 = arith.constant 0 : index
      %c384_55 = arith.constant 384 : index
      %82 = vector.load %arg3[%c0_54, %c384_55] : memref<8x512xf32, #tpu.memory_space<vmem>>, vector<8x128xf32>
      %c0_56 = arith.constant 0 : index
      %c384_57 = arith.constant 384 : index
      %83 = vector.load %arg4[%c0_56, %c384_57] : memref<8x512xf32, #tpu.memory_space<vmem>>, vector<8x128xf32>
      %84 = arith.subf %81, %82 : vector<8x128xf32>
      %85 = arith.mulf %84, %83 : vector<8x128xf32>
      %86 = arith.mulf %85, %85 : vector<8x128xf32>
      %87 = tpu.iota {dimensions = array<i32: 1>} : vector<8x128xi32>
      %c512_i32_58 = arith.constant 512 : i32
      %88 = arith.muli %arg1, %c512_i32_58 : i32
      %89 = vector.broadcast %88 : i32 to vector<8x128xi32>
      %90 = arith.addi %87, %89 : vector<8x128xi32>
      %c384_i32 = arith.constant 384 : i32
      %91 = vector.broadcast %c384_i32 : i32 to vector<8x128xi32>
      %92 = arith.addi %90, %91 : vector<8x128xi32>
      %c1000_i32_59 = arith.constant 1000 : i32
      %93 = vector.broadcast %c1000_i32_59 : i32 to vector<8x128xi32>
      %94 = arith.cmpi slt, %92, %93 : vector<8x128xi32>
      %cst_60 = arith.constant 0.000000e+00 : f32
      %95 = vector.broadcast %cst_60 : f32 to vector<8x128xf32>
      %96 = arith.select %94, %86, %95 : vector<8x128xi1>, vector<8x128xf32>
      %cst_61 = arith.constant 0.000000e+00 : f32
      %97 = vector.broadcast %cst_61 : f32 to vector<8x128xf32>
      %98 = arith.select %94, %83, %97 : vector<8x128xi1>, vector<8x128xf32>
      %c0_62 = arith.constant 0 : index
      %c0_63 = arith.constant 0 : index
      %99 = vector.load %arg5[%c0_62, %c0_63] : memref<8x128xf32, #tpu.memory_space<vmem>>, vector<8x128xf32>
      %100 = arith.addf %99, %96 : vector<8x128xf32>
      %c0_64 = arith.constant 0 : index
      %c0_65 = arith.constant 0 : index
      %101 = vector.load %arg5[%c0_64, %c0_65] : memref<8x128xf32, #tpu.memory_space<vmem>>, vector<8x128xf32>
      tpu.vector_store %arg5[%c0_64, %c0_65], %100 {strides = array<i32>} : memref<8x128xf32, #tpu.memory_space<vmem>>, vector<8x128xf32>,
      %c0_66 = arith.constant 0 : index
      %c0_67 = arith.constant 0 : index
      %102 = vector.load %arg6[%c0_66, %c0_67] : memref<8x128xf32, #tpu.memory_space<vmem>>, vector<8x128xf32>
      %103 = arith.addf %102, %98 : vector<8x128xf32>
      %c0_68 = arith.constant 0 : index
      %c0_69 = arith.constant 0 : index
      %104 = vector.load %arg6[%c0_68, %c0_69] : memref<8x128xf32, #tpu.memory_space<vmem>>, vector<8x128xf32>
      tpu.vector_store %arg6[%c0_68, %c0_69], %103 {strides = array<i32>} : memref<8x128xf32, #tpu.memory_space<vmem>>, vector<8x128xf32>,
    } else {
    }
    %c1_i32_2 = arith.constant 1 : i32
    %6 = arith.cmpi slt, %arg1, %c1_i32_2 : i32
    %7 = arith.extui %6 : i1 to i32
    %c0_i32_3 = arith.constant 0 : i32
    %8 = arith.cmpi ne, %7, %c0_i32_3 : i32
    scf.if %8 {
      %c0 = arith.constant 0 : index
      %c0_4 = arith.constant 0 : index
      %9 = vector.load %arg2[%c0, %c0_4] : memref<8x512xf32, #tpu.memory_space<vmem>>, vector<8x128xf32>
      %c0_5 = arith.constant 0 : index
      %c0_6 = arith.constant 0 : index
      %10 = vector.load %arg3[%c0_5, %c0_6] : memref<8x512xf32, #tpu.memory_space<vmem>>, vector<8x128xf32>
      %c0_7 = arith.constant 0 : index
      %c0_8 = arith.constant 0 : index
      %11 = vector.load %arg4[%c0_7, %c0_8] : memref<8x512xf32, #tpu.memory_space<vmem>>, vector<8x128xf32>
      %12 = arith.subf %9, %10 : vector<8x128xf32>
      %13 = arith.mulf %12, %11 : vector<8x128xf32>
      %14 = arith.mulf %13, %13 : vector<8x128xf32>
      %c0_9 = arith.constant 0 : index
      %c0_10 = arith.constant 0 : index
      %15 = vector.load %arg5[%c0_9, %c0_10] : memref<8x128xf32, #tpu.memory_space<vmem>>, vector<8x128xf32>
      %16 = arith.addf %15, %14 : vector<8x128xf32>
      %c0_11 = arith.constant 0 : index
      %c0_12 = arith.constant 0 : index
      %17 = vector.load %arg5[%c0_11, %c0_12] : memref<8x128xf32, #tpu.memory_space<vmem>>, vector<8x128xf32>
      tpu.vector_store %arg5[%c0_11, %c0_12], %16 {strides = array<i32>} : memref<8x128xf32, #tpu.memory_space<vmem>>, vector<8x128xf32>,
      %c0_13 = arith.constant 0 : index
      %c0_14 = arith.constant 0 : index
      %18 = vector.load %arg6[%c0_13, %c0_14] : memref<8x128xf32, #tpu.memory_space<vmem>>, vector<8x128xf32>
      %19 = arith.addf %18, %11 : vector<8x128xf32>
      %c0_15 = arith.constant 0 : index
      %c0_16 = arith.constant 0 : index
      %20 = vector.load %arg6[%c0_15, %c0_16] : memref<8x128xf32, #tpu.memory_space<vmem>>, vector<8x128xf32>
      tpu.vector_store %arg6[%c0_15, %c0_16], %19 {strides = array<i32>} : memref<8x128xf32, #tpu.memory_space<vmem>>, vector<8x128xf32>,
      %c0_17 = arith.constant 0 : index
      %c128 = arith.constant 128 : index
      %21 = vector.load %arg2[%c0_17, %c128] : memref<8x512xf32, #tpu.memory_space<vmem>>, vector<8x128xf32>
      %c0_18 = arith.constant 0 : index
      %c128_19 = arith.constant 128 : index
      %22 = vector.load %arg3[%c0_18, %c128_19] : memref<8x512xf32, #tpu.memory_space<vmem>>, vector<8x128xf32>
      %c0_20 = arith.constant 0 : index
      %c128_21 = arith.constant 128 : index
      %23 = vector.load %arg4[%c0_20, %c128_21] : memref<8x512xf32, #tpu.memory_space<vmem>>, vector<8x128xf32>
      %24 = arith.subf %21, %22 : vector<8x128xf32>
      %25 = arith.mulf %24, %23 : vector<8x128xf32>
      %26 = arith.mulf %25, %25 : vector<8x128xf32>
      %c0_22 = arith.constant 0 : index
      %c0_23 = arith.constant 0 : index
      %27 = vector.load %arg5[%c0_22, %c0_23] : memref<8x128xf32, #tpu.memory_space<vmem>>, vector<8x128xf32>
      %28 = arith.addf %27, %26 : vector<8x128xf32>
      %c0_24 = arith.constant 0 : index
      %c0_25 = arith.constant 0 : index
      %29 = vector.load %arg5[%c0_24, %c0_25] : memref<8x128xf32, #tpu.memory_space<vmem>>, vector<8x128xf32>
      tpu.vector_store %arg5[%c0_24, %c0_25], %28 {strides = array<i32>} : memref<8x128xf32, #tpu.memory_space<vmem>>, vector<8x128xf32>,
      %c0_26 = arith.constant 0 : index
      %c0_27 = arith.constant 0 : index
      %30 = vector.load %arg6[%c0_26, %c0_27] : memref<8x128xf32, #tpu.memory_space<vmem>>, vector<8x128xf32>
      %31 = arith.addf %30, %23 : vector<8x128xf32>
      %c0_28 = arith.constant 0 : index
      %c0_29 = arith.constant 0 : index
      %32 = vector.load %arg6[%c0_28, %c0_29] : memref<8x128xf32, #tpu.memory_space<vmem>>, vector<8x128xf32>
      tpu.vector_store %arg6[%c0_28, %c0_29], %31 {strides = array<i32>} : memref<8x128xf32, #tpu.memory_space<vmem>>, vector<8x128xf32>,
      %c0_30 = arith.constant 0 : index
      %c256 = arith.constant 256 : index
      %33 = vector.load %arg2[%c0_30, %c256] : memref<8x512xf32, #tpu.memory_space<vmem>>, vector<8x128xf32>
      %c0_31 = arith.constant 0 : index
      %c256_32 = arith.constant 256 : index
      %34 = vector.load %arg3[%c0_31, %c256_32] : memref<8x512xf32, #tpu.memory_space<vmem>>, vector<8x128xf32>
      %c0_33 = arith.constant 0 : index
      %c256_34 = arith.constant 256 : index
      %35 = vector.load %arg4[%c0_33, %c256_34] : memref<8x512xf32, #tpu.memory_space<vmem>>, vector<8x128xf32>
      %36 = arith.subf %33, %34 : vector<8x128xf32>
      %37 = arith.mulf %36, %35 : vector<8x128xf32>
      %38 = arith.mulf %37, %37 : vector<8x128xf32>
      %c0_35 = arith.constant 0 : index
      %c0_36 = arith.constant 0 : index
      %39 = vector.load %arg5[%c0_35, %c0_36] : memref<8x128xf32, #tpu.memory_space<vmem>>, vector<8x128xf32>
      %40 = arith.addf %39, %38 : vector<8x128xf32>
      %c0_37 = arith.constant 0 : index
      %c0_38 = arith.constant 0 : index
      %41 = vector.load %arg5[%c0_37, %c0_38] : memref<8x128xf32, #tpu.memory_space<vmem>>, vector<8x128xf32>
      tpu.vector_store %arg5[%c0_37, %c0_38], %40 {strides = array<i32>} : memref<8x128xf32, #tpu.memory_space<vmem>>, vector<8x128xf32>,
      %c0_39 = arith.constant 0 : index
      %c0_40 = arith.constant 0 : index
      %42 = vector.load %arg6[%c0_39, %c0_40] : memref<8x128xf32, #tpu.memory_space<vmem>>, vector<8x128xf32>
      %43 = arith.addf %42, %35 : vector<8x128xf32>
      %c0_41 = arith.constant 0 : index
      %c0_42 = arith.constant 0 : index
      %44 = vector.load %arg6[%c0_41, %c0_42] : memref<8x128xf32, #tpu.memory_space<vmem>>, vector<8x128xf32>
      tpu.vector_store %arg6[%c0_41, %c0_42], %43 {strides = array<i32>} : memref<8x128xf32, #tpu.memory_space<vmem>>, vector<8x128xf32>,
      %c0_43 = arith.constant 0 : index
      %c384 = arith.constant 384 : index
      %45 = vector.load %arg2[%c0_43, %c384] : memref<8x512xf32, #tpu.memory_space<vmem>>, vector<8x128xf32>
      %c0_44 = arith.constant 0 : index
      %c384_45 = arith.constant 384 : index
      %46 = vector.load %arg3[%c0_44, %c384_45] : memref<8x512xf32, #tpu.memory_space<vmem>>, vector<8x128xf32>
      %c0_46 = arith.constant 0 : index
      %c384_47 = arith.constant 384 : index
      %47 = vector.load %arg4[%c0_46, %c384_47] : memref<8x512xf32, #tpu.memory_space<vmem>>, vector<8x128xf32>
      %48 = arith.subf %45, %46 : vector<8x128xf32>
      %49 = arith.mulf %48, %47 : vector<8x128xf32>
      %50 = arith.mulf %49, %49 : vector<8x128xf32>
      %c0_48 = arith.constant 0 : index
      %c0_49 = arith.constant 0 : index
      %51 = vector.load %arg5[%c0_48, %c0_49] : memref<8x128xf32, #tpu.memory_space<vmem>>, vector<8x128xf32>
      %52 = arith.addf %51, %50 : vector<8x128xf32>
      %c0_50 = arith.constant 0 : index
      %c0_51 = arith.constant 0 : index
      %53 = vector.load %arg5[%c0_50, %c0_51] : memref<8x128xf32, #tpu.memory_space<vmem>>, vector<8x128xf32>
      tpu.vector_store %arg5[%c0_50, %c0_51], %52 {strides = array<i32>} : memref<8x128xf32, #tpu.memory_space<vmem>>, vector<8x128xf32>,
      %c0_52 = arith.constant 0 : index
      %c0_53 = arith.constant 0 : index
      %54 = vector.load %arg6[%c0_52, %c0_53] : memref<8x128xf32, #tpu.memory_space<vmem>>, vector<8x128xf32>
      %55 = arith.addf %54, %47 : vector<8x128xf32>
      %c0_54 = arith.constant 0 : index
      %c0_55 = arith.constant 0 : index
      %56 = vector.load %arg6[%c0_54, %c0_55] : memref<8x128xf32, #tpu.memory_space<vmem>>, vector<8x128xf32>
      tpu.vector_store %arg6[%c0_54, %c0_55], %55 {strides = array<i32>} : memref<8x128xf32, #tpu.memory_space<vmem>>, vector<8x128xf32>,
    } else {
    }
    return
  }
  func.func @transform_0(%arg0: i32, %arg1: i32) -> (i32, i32) {
    %c0_i32 = arith.constant 0 : i32
    return %arg0, %arg1 : i32, i32
  }
  func.func @transform_1(%arg0: i32, %arg1: i32) -> (i32, i32) {
    %c0_i32 = arith.constant 0 : i32
    return %arg0, %arg1 : i32, i32
  }
  func.func @transform_2(%arg0: i32, %arg1: i32) -> (i32, i32) {
    %c0_i32 = arith.constant 0 : i32
    return %arg0, %arg1 : i32, i32
  }
  func.func @transform_3(%arg0: i32, %arg1: i32) -> (i32, i32) {
    %c0_i32 = arith.constant 0 : i32
    %c0_i32_0 = arith.constant 0 : i32
    return %arg0, %c0_i32 : i32, i32
  }
  func.func @transform_4(%arg0: i32, %arg1: i32) -> (i32, i32) {
    %c0_i32 = arith.constant 0 : i32
    %c0_i32_0 = arith.constant 0 : i32
    return %arg0, %c0_i32 : i32, i32
  }
}

</mosaic_0001>

<bundles_post_ra>
// kernel: tpu_custom_call.1
= control target key start
LH: loop header
LB: loop body
LE: loop exit
PB: predicated region body
PF: predicated region fallthrough
CT: control target
= control target key end

     0   :  { %s1378_s0 = inlined_call_operand.hbm [shape: f32[10,1000], index: 0, kind: input, shape index: {}]   ;;  %s1379_s1 = inlined_call_operand.hbm [shape: f32[10,1000], index: 1, kind: input, shape index: {}]   ;;  %s1380_s2 = inlined_call_operand.hbm [shape: f32[10,1000], index: 2, kind: input, shape index: {}]   ;;  %s1381_s3 = inlined_call_operand.hbm [shape: f32[10,128], index: 3, kind: output, shape index: {0}]   ;;  %s1382_s4 = inlined_call_operand.hbm [shape: f32[10,128], index: 4, kind: output, shape index: {1}]  }
   0x1   :  { %1389 = sst [smem:[#allocation22_spill]] %s1378_s0 }
   0x2   :  { %1390 = sst [smem:[#allocation23_spill]] %s1379_s1 }
   0x3   :  { %10 = vsyncpa [#allocation3], 0 }
   0x4   :  { %12 = vsyncpa [#allocation3 + $0x1], 0 }
   0x5   :  { %13 = vsyncpa [#allocation6], 0 }
   0x6   :  { %15 = vsyncpa [#allocation6 + $0x1], 0 }
   0x7   :  { %16 = vsyncpa [#allocation4], 0 }
   0x8   :  { %18 = vsyncpa [#allocation4 + $0x1], 0 }
   0x9   :  { %19 = vsyncpa [#allocation10], 0 }
   0xa   :  { %21 = vsyncpa [#allocation10 + $0x1], 0  ;;  %s1073_s15 = smov 0   ;;  %s1075_s16 = smov 0  }
   0xb   :  { %s1077_s17 = smov 0   ;;  %s1079_s18 = smov 0  }
   0xc   :  { %s1081_s19 = smov 0   ;;  %s1083_s20 = smov 0  }
   0xd   :  { %s1085_s21 = smov 0   ;;  %s1087_s22 = smov 0  }
   0xe   :  { %s1089_s23 = smov 0   ;;  %s1091_s24 = smov 0  }
   0xf   :  { %s1093_s25 = smov 0  }
  0x10 LB: > { %1391 = sst [smem:[#allocation15_spill]] %s1008_s17  ;;  %s1127_s26 = sadd.s32 4294967295, %s1040_s25   ;;  %s1040_s25 = sphi %s1093_s25, %s27_s25   ;;  %s1036_s24 = sphi %s1091_s24, %s1413_s24   ;;  %s1032_s23 = sphi %s1089_s23, %s1412_s23   ;;  %s1028_s22 = sphi %s1087_s22, %s1411_s22   ;;  %s1024_s21 = sphi %s1085_s21, %s1410_s21   ;;  %s1020_s20 = sphi %s1083_s20, %s1418_s20   ;;  %s1016_s19 = sphi %s1081_s19, %s1417_s19   ;;  %s1012_s18 = sphi %s1079_s18, %s1416_s18   ;;  %s1008_s17 = sphi %s1077_s17, %s1408_s17   ;;  %s1004_s16 = sphi %s1075_s16, %s1415_s16   ;;  %s1000_s15 = sphi %s1073_s15, %s1414_s15  }
  0x11   : > { %1392 = sst [smem:[#allocation16_spill]] %s1032_s23  ;;  %s653_s27 = sadd.s32 4294967294, %s1040_s25  }
  0x12   : > { %1393 = sst [smem:[#allocation17_spill]] %s1036_s24  ;;  %s36_s28 = sadd.s32 1, %s1032_s23 }
  0x13   : > { %s39_s29 = sadd.s32 1, %s1036_s24  ;;  %p37_p0 = scmp.ge.s32.totalorder %s36_s28, 2 }
  0x14   : > { %s48_s30 = sadd.s32 1, %s1020_s20  ;;  %p55_p1 = scmp.ne.s32.totalorder %s1020_s20, %s1016_s19 }
  0x15   : > { %p56_p2 = scmp.eq.s32.totalorder %s1040_s25, 0  ;;  %s1420_s28 = smov (%p37_p0, %s36_s28), 0 }
  0x16   : > { %1394 = sst [smem:[#allocation18_spill]] %s1420_s28  ;;  %s1422_s29 = smov (!%p37_p0, %s39_s29), %s1036_s24 }
  0x17   : > { %s44_s5 = ssub.s32 %s1032_s23, %s1420_s28  ;;  %p1141_p3 = por %p56_p2, %p55_p1 }
  0x18   : > { %p41_p4 = scmp.ge.s32.totalorder %s1422_s29, 2  ;;  %p61_p5 = scmp.ne.s32.totalorder %s1016_s19, %s1012_s18 }
  0x19   : > { %p62_p6 = scmp.eq.s32.totalorder %s1127_s26, 0  ;;  %s130_s7 = sadd.s32 1, %s1008_s17 }
  0x1a   : > { %s1424_s29 = smov (%p41_p4, %s1422_s29), 0  ;;  %p140_p8 = scmp.ne.s32.totalorder %s1008_s17, %s1004_s16 }
  0x1b   : > { %1396 = sst [smem:[#allocation19_spill]] %s1424_s29  ;;  %p1150_p7 = por %p62_p6, %p61_p5 }
  0x1c   : > { %s43_s9 = ssub.s32 %s1036_s24, %s1424_s29  ;;  %p141_p9 = scmp.eq.s32.totalorder %s1127_s26, 3 }
  0x1d   : > { %s45_s10 = sor.u32 %s44_s5, %s43_s9  ;;  %p128_p10 = scmp.eq.s32.totalorder %s43_s9, 0 }
  0x1e   : > { %p46_p11 = scmp.eq.s32.totalorder %s45_s10, 0  ;;  %p1159_p12 = por %p141_p9, %p140_p8 }
  0x1f   : > { %s1164_s12 = scalar_select %p128_p10, %s1008_s17, %s130_s7  }
  0x20   : > { %s1167_s13 = scalar_select %p46_p11, %s1020_s20, %s48_s30  }
  0x21   : > { %1399 = sst [smem:[#allocation20_spill]] %s1164_s12  ;;  %p146_p13 = scmp.ne.s32.totalorder %s1004_s16, %s1000_s15 }
  0x22   : > { %1400 = sst [smem:[#allocation21_spill]] %s1167_s13  ;;  %p147_p0 = scmp.eq.s32.totalorder %s653_s27, 3 }
  0x23   : > { %p711_p1 = scmp.lt.s32.totalorder %s1040_s25, 4  ;;  %s1385_s18 = sand.u32 1, %s1020_s20  }
  0x24   : > { %p1172_p2 = por %p147_p0, %p146_p13  ;;  %s1179_s5 = sshll.u32 %s1385_s18, 5 }
  0x25   : > { %s657_s9 = sshll.u32 %s1032_s23, 2  ;;  %s658_s10 = sshll.u32 %s1036_s24, 3 }
  0x26   : > { %p1185_p4 = pnand %p711_p1, %p1141_p3  ;;  %s203_s27 = sadd.s32 %s658_s10, %s657_s9 }
  0x27   : > { %s214_s30 = sand.u32 1, %s1040_s25   ;;  %s1190_s29 = sshll.u32 %s203_s27, 7 }
  0x28   : > { %s1403_s1 = sld [smem:[#allocation23_spill]]  ;;  %s218_s12 = scalar_lea.vmem [#allocation5], %s1179_s5 }
  0x29   : > { %s228_s17 = sshll.u32 %s218_s12, 4  ;;  %p668_p5 = scmp.ge.s32.totalorder %s1040_s25, 1  ;;  %s229_s17 = int_to_ptr.vmem [resolvable:$true] %s228_s17 }
  0x2a   : > { %s1198_s6 = scalar_lea.sflag [#allocation6], %s214_s30  ;;  %p804_p3 = pneg %p1185_p4 }
  0x2b   : > { %s815_s24 = scalar_lea.vmem %s229_s17, 512  ;;  %s1042_s9 = smov [#allocation5]  }
  0x2c   : > { %p816_p6 = scmp.ne.s32.totalorder %s229_s17, %s815_s24  ;;  %s820_s10 = sshll.u32 %s1042_s9, 4  ;;  %s821_s10 = int_to_ptr.vmem [resolvable:$false] %s820_s10 }
  0x2d   : > { %s822_s27 = scalar_lea.vmem %s821_s10, 1024  ;;  %p823_p10 = scmp.lt.s32.totalorder %s229_s17, %s821_s10 }
  0x2e   : > { %s226_s18 = scalar_lea.hbm %s1403_s1, %s1190_s29  ;;  %p818_p8 = pnand %p816_p6, %p804_p3 }
  0x2f   : > { %p824_p11 = scmp.lt.s32.totalorder %s822_s27, %s815_s24 }
  0x30   : > { %p819_p9 = pneg %p818_p8 }
  0x31   : > { %p825_p13 = por %p824_p11, %p823_p10 }
  0x33   : > { %p826_p0 = pnand %p825_p13, %p819_p9 }
  0x35   : > { %829 = shalt.err (!%p826_p0)
}
  0x36   : > { %700 = dma.hbm_to_vmem [thread:$0]  (!%p1185_p4), %s226_s18, 512, %s229_s17, %s1198_s6  }
  0x37   : > { %p254_p1 = scmp.lt.s32.totalorder %s1040_s25, 5  ;;  %s1405_s0 = sld [smem:[#allocation22_spill]] }
  0x38   : > { %s197_s30 = scalar_lea.vmem [#allocation2], %s1179_s5  ;;  %s1406_s10 = sand.u32 1, %s1020_s20  }
  0x39   : > { %p1211_p6 = pnand %p668_p5, %p254_p1  ;;  %s207_s9 = sshll.u32 %s197_s30, 4  ;;  %s208_s9 = int_to_ptr.vmem [resolvable:$true] %s207_s9 }
  0x3a   : > { %s194_s27 = scalar_lea.sflag [#allocation3], %s1406_s10  ;;  %s843_s1 = scalar_lea.vmem %s208_s9, 512 }
  0x3b   : > { %p844_p8 = scmp.ne.s32.totalorder %s208_s9, %s843_s1  ;;  %s1043_s17 = smov [#allocation2]  }
  0x3c   : > { %s848_s18 = sshll.u32 %s1043_s17, 4  ;;  %s849_s18 = int_to_ptr.vmem [resolvable:$false] %s848_s18 }
  0x3d   : > { %s205_s13 = scalar_lea.hbm %s1405_s0, %s1190_s29  ;;  %p846_p9 = pnand %p844_p8, %p804_p3 }
  0x3e   : > { %s850_s23 = scalar_lea.vmem %s849_s18, 1024  ;;  %p851_p5 = scmp.lt.s32.totalorder %s208_s9, %s849_s18 }
  0x3f   : > { %p847_p10 = pneg %p846_p9  ;;  %p852_p11 = scmp.lt.s32.totalorder %s850_s23, %s843_s1 }
  0x41   : > { %p853_p13 = por %p852_p11, %p851_p5 }
  0x43   : > { %p854_p0 = pnand %p853_p13, %p847_p10 }
  0x45   : > { %857 = shalt.err (!%p854_p0)
}
  0x46   : > { %697 = dma.hbm_to_vmem [thread:$0]  (!%p1185_p4), %s205_s13, 512, %s208_s9, %s194_s27  }
  0x47   : > { %s247_s30 = scalar_lea.hbm %s1380_s2, %s1190_s29  ;;  %s239_s10 = scalar_lea.vmem [#allocation7], %s1179_s5 }
  0x48   : > { %s249_s0 = sshll.u32 %s239_s10, 4  ;;  %s1044_s1 = smov [#allocation7]   ;;  %s250_s0 = int_to_ptr.vmem [resolvable:$true] %s249_s0 }
  0x49   : > { %s871_s17 = scalar_lea.vmem %s250_s0, 512  ;;  %s876_s23 = sshll.u32 %s1044_s1, 4  ;;  %s877_s23 = int_to_ptr.vmem [resolvable:$false] %s876_s23 }
  0x4a   : > { %p872_p1 = scmp.ne.s32.totalorder %s250_s0, %s871_s17  ;;  %s878_s18 = scalar_lea.vmem %s877_s23, 1024 }
  0x4b   : > { %p879_p10 = scmp.lt.s32.totalorder %s250_s0, %s877_s23  ;;  %p880_p5 = scmp.lt.s32.totalorder %s878_s18, %s871_s17 }
  0x4c   : > { %p874_p8 = pnand %p872_p1, %p804_p3 }
  0x4d   : > { %p881_p11 = por %p880_p5, %p879_p10 }
  0x4e   : > { %p875_p9 = pneg %p874_p8 }
  0x50   : > { %p882_p13 = pnand %p881_p11, %p875_p9 }
  0x52   : > { %885 = shalt.err (!%p882_p13)
}
  0x53   : > { %703 = dma.hbm_to_vmem [thread:$0]  (!%p1185_p4), %s247_s30, 512, %s250_s0, %s1198_s6  }
  0x54   : > { %258 = sbr.rel (%p1211_p6) target bundleno = 198 (0xc6), region = 32  ;;  %s260_s29 = sand.u32 (!%p1211_p6), 1, %s1016_s19  }
  0x55   : > { %s669_s5 = sshll.u32 (!%p1211_p6), %s260_s29, 5  ;;  %s261_s13 = scalar_lea.sflag (!%p1211_p6), [#allocation3], %s260_s29 }
  0x56   : > { %s1241_s9 = scalar_lea.vmem (!%p1211_p6), [#allocation2], %s669_s5 }
  0x59   : > { %983 = dma.done.wait (%p1150_p7), %s261_s13, 512  }
  0x5a   : > { %985 = vsyncadd (%p1150_p7), %s261_s13, 4294966784  ;;  %s269_s7 = sand.u32 1, %s1127_s26   ;;  %s1248_s0 = scalar_lea.vmem [#allocation5], %s669_s5 }
  0x5b   : > { %s270_s27 = scalar_lea.sflag [#allocation6], %s269_s7 }
  0x5c   : > { %987 = dma.done.wait (%p1150_p7), %s270_s27, 1024  }
  0x5d   : > { %989 = vsyncadd (%p1150_p7), %s270_s27, 4294966272  ;;  %s1255_s6 = sand.u32 1, %s1004_s16   ;;  %s1258_s24 = scalar_lea.vmem [#allocation7], %s669_s5 }
  0x5e   : > { %s672_s28 = sshll.u32 %s1255_s6, 3  ;;  %p674_p4 = scmp.ne.s32.totalorder %s1024_s21, 0 }
  0x5f   : > { %s1260_s12 = scalar_lea.vmem [#allocation8], %s672_s28  ;;  %s1262_s30 = scalar_lea.vmem [#allocation9], %s672_s28 }
  0x60   : > { %328 = sbr.rel (%p674_p4) target bundleno = 103 (0x67), region = 48 }
  0x65   : > { %v1045_v0 = vmov 0.0  }
  0x66   : > { %329 = vst [vmem:[%s1260_s12] sm:$0xff] %v1045_v0  ;;  %330 = vst [vmem:[%s1262_s30] sm:$0xff] %v1045_v0 }
  0x67 PF: > { %p675_p7 = scmp.ne.s32.totalorder %s1024_s21, 1 }
  0x68   : > { %s676_s26 = sshll.u32 (!%p675_p7), %s1024_s21, 9 }
  0x69   : > { %334 = sbr.rel (%p675_p7) target bundleno = 128 (0x80), region = 52 }
  0x6e   : > { %v335_v1 = vld [vmem:[%s1241_s9] sm:$0xff]  ;;  %v341_v4 = vlaneseq  ;;  %v344_v6 = vstv %s676_s26  ;;  %v355_v7 = vld [vmem:[%s1241_s9 + $0x8] sm:$0xff]  ;;  %v371_v11 = vld [vmem:[%s1241_s9 + $0x10] sm:$0xff] }
  0x6f   : > { %v336_v2 = vld [vmem:[%s1248_s0] sm:$0xff]  ;;  %v356_v9 = vld [vmem:[%s1248_s0 + $0x8] sm:$0xff]  ;;  %v372_v14 = vld [vmem:[%s1248_s0 + $0x10] sm:$0xff] }
  0x70   : > { %v337_v3 = vld [vmem:[%s1258_s24] sm:$0xff]  ;;  %v338_v5 = vsub.f32 %v335_v1, %v336_v2  ;;  %v342_v8 = vand.u32 127, %v341_v4  ;;  %v357_v10 = vld [vmem:[%s1258_s24 + $0x8] sm:$0xff]  ;;  %v358_v13 = vsub.f32 %v355_v7, %v356_v9  ;;  %v373_v15 = vld [vmem:[%s1258_s24 + $0x10] sm:$0xff]  ;;  %v374_v18 = vsub.f32 %v371_v11, %v372_v14 }
  0x71   : > { %v387_v16 = vld [vmem:[%s1241_s9 + $0x18] sm:$0xff]  ;;  %v349_v22 = vld [vmem:[%s1260_s12] sm:$0xff] }
  0x72   : > { %v339_v12 = vmul.f32 %v338_v5, %v337_v3  ;;  %v345_v17 = vadd.s32 %v344_v6, %v342_v8  ;;  %v388_v19 = vld [vmem:[%s1248_s0 + $0x18] sm:$0xff]  ;;  %v359_v24 = vmul.f32 %v358_v13, %v357_v10  ;;  %v375_v27 = vmul.f32 %v374_v18, %v373_v15 }
  0x73   : > { %v389_v20 = vld [vmem:[%s1258_s24 + $0x18] sm:$0xff]  ;;  %v390_v25 = vsub.f32 %v387_v16, %v388_v19 }
  0x74   : > { %v340_v21 = vmul.f32 %v339_v12, %v339_v12  ;;  %v352_v23 = vld [vmem:[%s1262_s30] sm:$0xff]  ;;  %vm346_vm0 = vcmp.lt.s32.totalorder %v345_v17, 1000  ;;  %v361_v26 = vadd.s32 128, %v345_v17  ;;  %v377_v28 = vadd.s32 256, %v345_v17 }
  0x75   : > { %v348_v30 = vsel %vm346_vm0, %v337_v3, 0.0  ;;  %v360_v31 = vmul.f32 %v359_v24, %v359_v24  ;;  %v391_v32 = vmul.f32 %v390_v25, %v389_v20  ;;  %v376_v35 = vmul.f32 %v375_v27, %v375_v27 }
  0x76   : > { %v347_v29 = vsel %vm346_vm0, %v340_v21, 0.0  ;;  %v353_v34 = vadd.f32 %v352_v23, %v348_v30  ;;  %vm362_vm1 = vcmp.lt.s32.totalorder %v361_v26, 1000  ;;  %vm378_vm2 = vcmp.lt.s32.totalorder %v377_v28, 1000 }
  0x77   : > { %v350_v33 = vadd.f32 %v349_v22, %v347_v29  ;;  %v363_v36 = vsel %vm362_vm1, %v360_v31, 0.0  ;;  %v364_v37 = vsel %vm362_vm1, %v357_v10, 0.0  ;;  %v392_v38 = vmul.f32 %v391_v32, %v391_v32 }
  0x78   : > { %v369_v40 = vadd.f32 %v364_v37, %v353_v34  ;;  %v379_v41 = vsel %vm378_vm2, %v376_v35, 0.0  ;;  %v380_v42 = vsel %vm378_vm2, %v373_v15, 0.0  ;;  %v393_v43 = vadd.s32 384, %v345_v17 }
  0x79   : > { %v366_v39 = vadd.f32 %v363_v36, %v350_v33 }
  0x7a   : > { %v385_v45 = vadd.f32 %v380_v42, %v369_v40  ;;  %vm394_vm3 = vcmp.lt.s32.totalorder %v393_v43, 1000 }
  0x7b   : > { %v382_v44 = vadd.f32 %v379_v41, %v366_v39  ;;  %v395_v46 = vsel %vm394_vm3, %v392_v38, 0.0  ;;  %v396_v47 = vsel %vm394_vm3, %v389_v20, 0.0 }
  0x7c   : > { %v401_v49 = vadd.f32 %v396_v47, %v385_v45 }
  0x7d   : > { %v398_v48 = vadd.f32 %v395_v46, %v382_v44 }
  0x7e   : > { %402 = vst [vmem:[%s1262_s30] sm:$0xff] %v401_v49 }
  0x7f   : > { %399 = vst [vmem:[%s1260_s12] sm:$0xff] %v398_v48 }
  0x80 PF: > { %p677_p3 = scmp.ge.s32.totalorder %s1024_s21, 1 }
  0x82   : > { %406 = sbr.rel (%p677_p3) target bundleno = 152 (0x98), region = 56 }
  0x87   : > { %v407_v50 = vld [vmem:[%s1241_s9] sm:$0xff]  ;;  %v416_v54 = vld [vmem:[%s1262_s30] sm:$0xff]  ;;  %v419_v55 = vld [vmem:[%s1241_s9 + $0x8] sm:$0xff] }
  0x88   : > { %v408_v51 = vld [vmem:[%s1248_s0] sm:$0xff]  ;;  %v420_v57 = vld [vmem:[%s1248_s0 + $0x8] sm:$0xff]  ;;  %v431_v59 = vld [vmem:[%s1241_s9 + $0x10] sm:$0xff] }
  0x89   : > { %v409_v52 = vld [vmem:[%s1258_s24] sm:$0xff]  ;;  %v410_v53 = vsub.f32 %v407_v50, %v408_v51  ;;  %v421_v58 = vld [vmem:[%s1258_s24 + $0x8] sm:$0xff]  ;;  %v422_v61 = vsub.f32 %v419_v55, %v420_v57  ;;  %v432_v62 = vld [vmem:[%s1248_s0 + $0x10] sm:$0xff] }
  0x8a   : > { %v417_v56 = vadd.f32 %v416_v54, %v409_v52  ;;  %v433_v63 = vld [vmem:[%s1258_s24 + $0x10] sm:$0xff]  ;;  %v443_v0 = vld [vmem:[%s1241_s9 + $0x18] sm:$0xff]  ;;  %v413_v1 = vld [vmem:[%s1260_s12] sm:$0xff]  ;;  %v434_v3 = vsub.f32 %v431_v59, %v432_v62 }
  0x8b   : > { %v411_v60 = vmul.f32 %v410_v53, %v409_v52  ;;  %v444_v4 = vld [vmem:[%s1248_s0 + $0x18] sm:$0xff]  ;;  %v423_v7 = vmul.f32 %v422_v61, %v421_v58 }
  0x8c   : > { %v429_v2 = vadd.f32 %v421_v58, %v417_v56  ;;  %v445_v5 = vld [vmem:[%s1258_s24 + $0x18] sm:$0xff]  ;;  %v446_v8 = vsub.f32 %v443_v0, %v444_v4  ;;  %v435_v9 = vmul.f32 %v434_v3, %v433_v63 }
  0x8d   : > { %v412_v6 = vmul.f32 %v411_v60, %v411_v60  ;;  %v424_v12 = vmul.f32 %v423_v7, %v423_v7 }
  0x8e   : > { %v441_v10 = vadd.f32 %v433_v63, %v429_v2  ;;  %v447_v13 = vmul.f32 %v446_v8, %v445_v5  ;;  %v436_v14 = vmul.f32 %v435_v9, %v435_v9 }
  0x8f   : > { %v414_v11 = vadd.f32 %v413_v1, %v412_v6 }
  0x90   : > { %v453_v15 = vadd.f32 %v445_v5, %v441_v10  ;;  %v448_v17 = vmul.f32 %v447_v13, %v447_v13 }
  0x91   : > { %v426_v16 = vadd.f32 %v424_v12, %v414_v11 }
  0x92   : > { %454 = vst [vmem:[%s1262_s30] sm:$0xff] %v453_v15 }
  0x93   : > { %v438_v18 = vadd.f32 %v436_v14, %v426_v16 }
  0x95   : > { %v450_v19 = vadd.f32 %v448_v17, %v438_v18 }
  0x97   : > { %451 = vst [vmem:[%s1260_s12] sm:$0xff] %v450_v19 }
  0x98 PF: > { %s680_s21 = sshll.u32 %s1028_s22, 7  ;;  %s474_s1 = sshll.u32 %s1260_s12, 4  ;;  %s475_s1 = int_to_ptr.vmem [resolvable:$true] %s474_s1 }
  0x99   : > { %s472_s17 = scalar_lea.hbm %s1381_s3, %s680_s21  ;;  %s456_s23 = scalar_lea.sflag [#allocation4], %s1255_s6 }
  0x9a   : > { %s886_s18 = scalar_lea.vmem %s475_s1, 128  ;;  %s1046_s29 = smov [#allocation8]  }
  0x9b   : > { %p887_p6 = scmp.ne.s32.totalorder %s475_s1, %s886_s18  ;;  %s890_s5 = sshll.u32 %s1046_s29, 4  ;;  %s891_s5 = int_to_ptr.vmem [resolvable:$false] %s890_s5 }
  0x9c   : > { %s892_s13 = scalar_lea.vmem %s891_s5, 256  ;;  %p893_p8 = scmp.lt.s32.totalorder %s475_s1, %s891_s5 }
  0x9d   : > { %p888_p0 = pnand %p887_p6, %p1159_p12  ;;  %p894_p9 = scmp.lt.s32.totalorder %s892_s13, %s886_s18 }
  0x9f   : > { %p889_p1 = pneg %p888_p0  ;;  %p895_p10 = por %p894_p9, %p893_p8 }
  0xa1   : > { %p896_p5 = pnand %p895_p10, %p889_p1 }
  0xa3   : > { %899 = shalt.err (!%p896_p5)
}
  0xa4   : > { %s900_s9 = scalar_lea.hbm %s472_s17, 128  ;;  %s904_s0 = scalar_lea.hbm %s1381_s3, 256 }
  0xa5   : > { %p901_p11 = scmp.ne.s32.totalorder %s472_s17, %s900_s9  ;;  %p905_p7 = scmp.lt.s32.totalorder %s472_s17, %s1381_s3 }
  0xa6   : > { %p906_p3 = scmp.lt.s32.totalorder %s904_s0, %s900_s9 }
  0xa7   : > { %p902_p13 = pnand %p901_p11, %p1159_p12 }
  0xa8   : > { %p907_p6 = por %p906_p3, %p905_p7 }
  0xa9   : > { %p903_p4 = pneg %p902_p13 }
  0xab   : > { %p908_p0 = pnand %p907_p6, %p903_p4 }
  0xad   : > { %911 = shalt.err (!%p908_p0)
}
  0xae   : > { %690 = dma.vmem_to_hbm [thread:$0]  (%p1159_p12), %s475_s1, 128, %s472_s17, %s456_s23  }
  0xaf   : > { %s485_s8 = scalar_lea.hbm %s1382_s4, %s680_s21  ;;  %s487_s10 = sshll.u32 %s1262_s30, 4  ;;  %s488_s10 = int_to_ptr.vmem [resolvable:$true] %s487_s10 }
  0xb0   : > { %s461_s18 = scalar_lea.sflag [#allocation10], %s1255_s6  ;;  %s912_s29 = scalar_lea.vmem %s488_s10, 128 }
  0xb1   : > { %p913_p1 = scmp.ne.s32.totalorder %s488_s10, %s912_s29  ;;  %s1047_s5 = smov [#allocation9]  }
  0xb2   : > { %s916_s13 = sshll.u32 %s1047_s5, 4  ;;  %s917_s13 = int_to_ptr.vmem [resolvable:$false] %s916_s13 }
  0xb3   : > { %p914_p8 = pnand %p913_p1, %p1159_p12  ;;  %s918_s9 = scalar_lea.vmem %s917_s13, 256 }
  0xb4   : > { %p919_p10 = scmp.lt.s32.totalorder %s488_s10, %s917_s13  ;;  %p920_p5 = scmp.lt.s32.totalorder %s918_s9, %s912_s29 }
  0xb5   : > { %p915_p9 = pneg %p914_p8 }
  0xb6   : > { %p921_p11 = por %p920_p5, %p919_p10 }
  0xb8   : > { %p922_p13 = pnand %p921_p11, %p915_p9 }
  0xba   : > { %925 = shalt.err (!%p922_p13)
}
  0xbb   : > { %s926_s22 = scalar_lea.hbm %s485_s8, 128  ;;  %s930_s21 = scalar_lea.hbm %s1382_s4, 256 }
  0xbc   : > { %p927_p4 = scmp.ne.s32.totalorder %s485_s8, %s926_s22  ;;  %p931_p6 = scmp.lt.s32.totalorder %s485_s8, %s1382_s4 }
  0xbd   : > { %p932_p0 = scmp.lt.s32.totalorder %s930_s21, %s926_s22 }
  0xbe   : > { %p928_p7 = pnand %p927_p4, %p1159_p12 }
  0xbf   : > { %p933_p1 = por %p932_p0, %p931_p6 }
  0xc0   : > { %p929_p3 = pneg %p928_p7 }
  0xc2   : > { %p934_p8 = pnand %p933_p1, %p929_p3 }
  0xc4   : > { %937 = shalt.err (!%p934_p8)
}
  0xc5   : > { %691 = dma.vmem_to_hbm [thread:$0]  (%p1159_p12), %s488_s10, 128, %s485_s8, %s461_s18  }
  0xc6 PF: > { %p712_p9 = scmp.ge.s32.totalorder %s1040_s25, 2  ;;  %s499_s23 = sand.u32 1, %s1000_s15  }
  0xc7   : > { %s500_s7 = scalar_lea.sflag [#allocation4], %s499_s23 }
  0xc8   : > { %p705_p10 = pnand %p712_p9, %p1172_p2 }
  0xca   : > { %p706_p5 = pneg %p705_p10 }
  0xcc   : > { %991 = dma.done.wait (%p706_p5), %s500_s7, 128  }
  0xcd   : > { %993 = vsyncadd (%p706_p5), %s500_s7, 4294967168  ;;  %s509_s27 = scalar_lea.sflag [#allocation10], %s499_s23 }
  0xce   : > { %995 = dma.done.wait (%p706_p5), %s509_s27, 128  }
  0xcf   : > { %997 = vsyncadd (%p706_p5), %s509_s27, 4294967168  ;;  %s27_s25 = sadd.s32 1, %s1040_s25   ;;  %s1407_s11 = sld [smem:[#allocation15_spill]] }
  0xd0   : > { %p24_p11 = scmp.ge.s32.totalorder %s27_s25, 6   ;;  %s1408_s17 = sld [smem:[#allocation20_spill]] }
  0xd1   : > { %s1409_s0 = sld [smem:[#allocation21_spill]]  ;;  %s1414_s15 = smov %s1004_s16 }
  0xd2   : > { %s1410_s21 = sld [smem:[#allocation16_spill]]  ;;  %s1416_s18 = smov %s1016_s19 }
  0xd3   : > { %s1411_s22 = sld [smem:[#allocation17_spill]]  ;;  %s1417_s19 = smov %s1020_s20 }
  0xd4   : > { %s1412_s23 = sld [smem:[#allocation18_spill]]  ;;  %26 = sbr.rel (!%p24_p11) target bundleno = 16 (0x10), region = 130 }
  0xd5   : > { %s1413_s24 = sld [smem:[#allocation19_spill]]  ;;  %s1415_s16 = smov %s1407_s11 }
  0xd7   : > { %s1418_s20 = smov %s1409_s0 }
  0xd9   :  { %514 = vsyncpa [#allocation3], 1 }
  0xda   :  { %516 = vsyncpa [#allocation3 + $0x1], 1 }
  0xdb   :  { %517 = vsyncpa [#allocation6], 1 }
  0xdc   :  { %519 = vsyncpa [#allocation6 + $0x1], 1 }
  0xdd   :  { %520 = vsyncpa [#allocation4], 1 }
  0xde   :  { %522 = vsyncpa [#allocation4 + $0x1], 1 }
  0xdf   :  { %523 = vsyncpa [#allocation10], 1 }
  0xe0   :  { %525 = vsyncpa [#allocation10 + $0x1], 1 }

</bundles_post_ra>
